<compile_context>
chip_gen: v7x
topology: tpu7x:2x2x1
jax: 0.10.0
libtpu: 0.0.40
codegen_flags: <defaults>
</compile_context>

<pallas_src>
import functools

import jax
import jax.numpy as jnp
from jax import lax
from jax.experimental import pallas as pl
from jax.experimental.pallas import tpu as pltpu
import numpy as np

BN_EPS = 1e-5
LANE = 128
VMEM_LIMIT_BYTES = 32 * 1024 * 1024   # explicit scoped-VMEM limit (safe on v5e/v6e/v7x)
VMEM_TILE_BUDGET = 20 * 1024 * 1024   # headroom under the limit when picking TM


def _round_up(x, m):
    return (x + m - 1) // m * m


def _pick_tm(tm_hint, M, K, F_pad, budget=VMEM_TILE_BUDGET):
    """Largest row-tile (multiple of 128) whose double-buffered VMEM footprint fits."""
    TM = _round_up(min(tm_hint, _round_up(M, LANE)), LANE)

    def vmem_estimate(tm):
        # pass 1: 2x patch tile (bf16) + 2x resident weight (bf16, conservative)
        #         + 2x bf16 conv tile + 2x stats tile
        p1 = 2 * tm * K * 2 + 2 * K * F_pad * 2 + 2 * tm * F_pad * 2 + 2 * 8 * F_pad * 4
        # pass 2: 2x bf16 conv tile + 2x f32 out tile + scale/shift vectors
        p2 = 2 * tm * F_pad * 2 + 2 * tm * F_pad * 4 + 4 * F_pad * 4
        return max(p1, p2)

    while TM > LANE and vmem_estimate(TM) > budget:
        TM = _round_up(TM // 2, LANE)
    return TM


def _conv_stats_kernel(patch_ref, w_ref, conv_ref, stats_ref):
    """Tiled conv-as-matmul (MXU) + per-tile partial BN statistics.

    patch_ref: (TM, K) bf16      w_ref: (K, F_pad) bf16
    conv_ref : (TM, F_pad) bf16  -- HBM intermediate, bf16 to halve traffic
    stats_ref: (8, F_pad) f32    -- row 0 = sum, row 1 = sum of squares
    """
    conv = jnp.dot(patch_ref[...], w_ref[...], preferred_element_type=jnp.float32)
    # bf16 cast only for the HBM round-trip; stats below use the f32 value.
    conv_ref[...] = conv.astype(conv_ref.dtype)

    s = jnp.sum(conv, axis=0, keepdims=True)            # (1, F_pad), f32
    sq = jnp.sum(conv * conv, axis=0, keepdims=True)    # (1, F_pad), f32
    stats_ref[...] = jnp.zeros_like(stats_ref)
    stats_ref[0:1, :] = s
    stats_ref[1:2, :] = sq


def _bn_hswish_kernel(conv_ref, scale_ref, shift_ref, o_ref):
    """y = conv*scale + shift (folded BN), then hswish: y*relu6(y+3)/6."""
    y = conv_ref[...].astype(jnp.float32) * scale_ref[...] + shift_ref[...]
    o_ref[...] = (y * jnp.clip(y + 3.0, 0.0, 6.0) * (1.0 / 6.0)).astype(o_ref.dtype)


def conv_bn_layer(x_nchw, weight, gamma, beta, *, stride, padding, tm=1024,
                  out_dtype=jnp.float32):
    """ConvBNLayer forward. weight has PyTorch layout (F, C, KH, KW)."""
    # TODO(synk): grouped conv (num_groups > 1) not implemented; groups=1 only.
    F_out, C_in, KH, KW = weight.shape
    N, C, H, W = x_nchw.shape
    assert C == C_in, "channel mismatch"

    # NCHW -> NHWC (bf16 for the matmul path), spatial zero padding.
    x = jnp.transpose(x_nchw, (0, 2, 3, 1)).astype(jnp.bfloat16)
    xp = jnp.pad(x, ((0, 0), (padding, padding), (padding, padding), (0, 0)))
    OH = (H + 2 * padding - KH) // stride + 1
    OW = (W + 2 * padding - KW) // stride + 1

    # im2col (glue): patch matrix ordered (kh, kw, c) along K, bf16.
    # TODO(synk): this still materializes a KH*KW-times expanded patch matrix in
    # HBM; for large-C production layers, build patch tiles in-kernel (manual DMA
    # of NHWC row slabs + an 'arbitrary' (kh,kw) reduction grid axis) to remove it.
    cols = []
    for dh in range(KH):
        for dw in range(KW):
            cols.append(xp[:, dh:dh + stride * OH:stride, dw:dw + stride * OW:stride, :])
    patches = jnp.concatenate(cols, axis=-1).reshape(N * OH * OW, KH * KW * C_in)

    M, K = patches.shape
    F_pad = _round_up(F_out, LANE)

    # Row-tile: multiple of 128, sized against the VMEM budget (prefer an even
    # number of tiles so the "parallel" M axis splits across v7x's two cores).
    # TODO(synk): for large K*F_pad layers add an F-blocking grid axis (TF = 256 on
    # v6e/v7x, 128 on v5e) instead of keeping the full (K, F_pad) weight resident.
    TM = _pick_tm(tm, M, K, F_pad)
    M_pad = _round_up(M, TM)
    nt = M_pad // TM
    if M_pad != M:
        patches = jnp.pad(patches, ((0, M_pad - M), (0, 0)))   # zero rows: 0 contribution to stats

    # Weight (F, C, KH, KW) -> (KH, KW, C, F) -> (K, F), padded to 128 lanes
    # (padded output channels are exactly 0 and get scale = shift = 0 below).
    w2 = jnp.transpose(weight, (2, 3, 1, 0)).reshape(K, F_out).astype(jnp.bfloat16)
    w2 = jnp.pad(w2, ((0, 0), (0, F_pad - F_out)))

    cparams = pltpu.CompilerParams(dimension_semantics=("parallel",),
                                   vmem_limit_bytes=VMEM_LIMIT_BYTES)

    # Pass 1: tiled matmul on the MXU + per-tile partial BN statistics (bf16 out).
    conv, stats = pl.pallas_call(
        _conv_stats_kernel,
        out_shape=(jax.ShapeDtypeStruct((M_pad, F_pad), jnp.bfloat16),
                   jax.ShapeDtypeStruct((nt * 8, F_pad), jnp.float32)),
        grid_spec=pltpu.PrefetchScalarGridSpec(
            num_scalar_prefetch=0,
            grid=(nt,),
            in_specs=[
                pl.BlockSpec((TM, K), lambda i: (i, 0)),        # patch tile
                pl.BlockSpec((K, F_pad), lambda i: (0, 0)),     # full weight (resident)
            ],
            out_specs=(
                pl.BlockSpec((TM, F_pad), lambda i: (i, 0)),    # bf16 conv tile
                pl.BlockSpec((8, F_pad), lambda i: (i, 0)),     # per-tile partial stats
            ),
        ),
        compiler_params=cparams,
    )(patches, w2)

    # Tiny cross-tile reduction + folded BN coefficients (128-wide XLA ops).
    stats = stats.reshape(nt, 8, F_pad)
    ch_sum = jnp.sum(stats[:, 0, :], axis=0)                    # (F_pad,)
    ch_sumsq = jnp.sum(stats[:, 1, :], axis=0)                  # (F_pad,)
    inv_m = 1.0 / float(M)
    mean = ch_sum * inv_m
    # NOTE: single-pass E[x^2]-E[x]^2 in f32; for very large M with |mean| >> std
    # consider a centered second stats pass if BN precision matters.
    var = jnp.maximum(ch_sumsq * inv_m - mean * mean, 0.0)
    g = jnp.pad(gamma.astype(jnp.float32), (0, F_pad - F_out))
    b = jnp.pad(beta.astype(jnp.float32), (0, F_pad - F_out))
    inv_std = lax.rsqrt(var + BN_EPS)
    scale = (g * inv_std).reshape(1, F_pad)
    shift = (b - mean * g * inv_std).reshape(1, F_pad)

    # Pass 2: folded BN + hswish, pure streaming FMA+clip over parallel tiles.
    out = pl.pallas_call(
        _bn_hswish_kernel,
        out_shape=jax.ShapeDtypeStruct((M_pad, F_pad), out_dtype),
        grid_spec=pltpu.PrefetchScalarGridSpec(
            num_scalar_prefetch=0,
            grid=(nt,),
            in_specs=[
                pl.BlockSpec((TM, F_pad), lambda i: (i, 0)),    # bf16 conv tile
                pl.BlockSpec((1, F_pad), lambda i: (0, 0)),     # scale
                pl.BlockSpec((1, F_pad), lambda i: (0, 0)),     # shift
            ],
            out_specs=pl.BlockSpec((TM, F_pad), lambda i: (i, 0)),
        ),
        compiler_params=cparams,
    )(conv, scale, shift)

    # Drop pad rows / pad channels, back to NCHW (kept f32/NCHW to match the
    # PyTorch module; pass out_dtype=jnp.bfloat16 / keep NHWC if the consumer allows).
    y = out[:M, :F_out].reshape(N, OH, OW, F_out)
    return jnp.transpose(y, (0, 3, 1, 2))


def _reference(x_nchw, weight, gamma, beta, stride, padding):
    conv = lax.conv_general_dilated(
        x_nchw.astype(jnp.float32), weight.astype(jnp.float32),
        window_strides=(stride, stride),
        padding=[(padding, padding), (padding, padding)],
        dimension_numbers=("NCHW", "OIHW", "NCHW"))
    mean = jnp.mean(conv, axis=(0, 2, 3), keepdims=True)
    var = jnp.mean((conv - mean) ** 2, axis=(0, 2, 3), keepdims=True)
    y = (conv - mean) * lax.rsqrt(var + BN_EPS)
    y = y * gamma.reshape(1, -1, 1, 1) + beta.reshape(1, -1, 1, 1)
    return y * jnp.clip(y + 3.0, 0.0, 6.0) / 6.0


if __name__ == "__main__":
    # ConvBNLayer(num_channels=4, filter_size=3, num_filters=8, stride=1, padding=1)
    N, C, H, W = 2, 4, 16, 16
    F_out, KH, KW = 8, 3, 3
    stride, padding = 1, 1

    key = jax.random.PRNGKey(0)
    kx, kw, kg, kb = jax.random.split(key, 4)
    x = jax.random.normal(kx, (N, C, H, W), dtype=jnp.float32)
    weight = jax.random.normal(kw, (F_out, C, KH, KW), dtype=jnp.float32) * 0.1
    gamma = 1.0 + 0.1 * jax.random.normal(kg, (F_out,), dtype=jnp.float32)
    beta = 0.1 * jax.random.normal(kb, (F_out,), dtype=jnp.float32)

    # tm=256 so the tiny demo (M = 512 rows) still exercises an even, multi-tile
    # "parallel" grid (2 tiles -> both v7x TensorCores) and the stats reduction.
    out = conv_bn_layer(x, weight, gamma, beta, stride=stride, padding=padding, tm=256)
    out = jax.block_until_ready(out)

    ref = jax.block_until_ready(_reference(x, weight, gamma, beta, stride, padding))
    assert out.shape == (N, F_out, H, W), out.shape
    # bf16 matmul inputs + bf16 conv intermediate (f32 stats / accumulation).
    np.testing.assert_allclose(np.asarray(out), np.asarray(ref), rtol=3e-2, atol=3e-2)

    print("KERNEL_OK")
</pallas_src>

<mosaic_0001>
module attributes {stable_mosaic.version = 11 : i64} {
  func.func @_conv_stats_kernel(%arg0: i32, %arg1: memref<256x36xbf16, #tpu.memory_space<vmem>>, %arg2: memref<36x128xbf16, #tpu.memory_space<vmem>>, %arg3: memref<256x128xbf16, #tpu.memory_space<vmem>>, %arg4: memref<8x128xf32, #tpu.memory_space<vmem>>) attributes {dimension_semantics = [#tpu.dimension_semantics<parallel>], iteration_bounds = array<i64: 2>, scalar_prefetch = 0 : i64, scratch_operands = 0 : i64, tpu.core_type = #tpu.core_type<tc>, window_params = [{transform_indices = @transform_0, window_bounds = array<i64: 256, 36>}, {pipeline_mode = #tpu.pipeline_mode<synchronous>, transform_indices = @transform_1, window_bounds = array<i64: 36, 128>}, {transform_indices = @transform_2, window_bounds = array<i64: 256, 128>}, {transform_indices = @transform_3, window_bounds = array<i64: 8, 128>}]} {
    %c0 = arith.constant 0 : index
    %c0_0 = arith.constant 0 : index
    %0 = vector.load %arg1[%c0, %c0_0] : memref<256x36xbf16, #tpu.memory_space<vmem>>, vector<256x36xbf16>
    %c0_1 = arith.constant 0 : index
    %c0_2 = arith.constant 0 : index
    %1 = vector.load %arg2[%c0_1, %c0_2] : memref<36x128xbf16, #tpu.memory_space<vmem>>, vector<36x128xbf16>
    %cst = arith.constant dense<0.000000e+00> : vector<256x128xf32>
    %2 = tpu.matmul %0, %1, %cst {dimension_numbers = #tpu.dot_dimension_numbers<[1], [0], [0], [1], [0, 0, 1, 1], [], []>} : vector<256x36xbf16>, vector<36x128xbf16>, vector<256x128xf32> -> vector<256x128xf32>
    %3 = arith.truncf %2 : vector<256x128xf32> to vector<256x128xbf16>
    %c0_3 = arith.constant 0 : index
    %c0_4 = arith.constant 0 : index
    %4 = vector.load %arg3[%c0_3, %c0_4] : memref<256x128xbf16, #tpu.memory_space<vmem>>, vector<256x128xbf16>
    tpu.vector_store %arg3[%c0_3, %c0_4], %3 {strides = array<i32>} : memref<256x128xbf16, #tpu.memory_space<vmem>>, vector<256x128xbf16>,
    %cst_5 = arith.constant dense<0.000000e+00> : vector<128xf32>
    %5 = vector.multi_reduction <add>, %2, %cst_5 [0] : vector<256x128xf32> to vector<128xf32>
    %6 = vector.shape_cast %5 : vector<128xf32> to vector<1x128xf32>
    %7 = arith.mulf %2, %2 : vector<256x128xf32>
    %cst_6 = arith.constant dense<0.000000e+00> : vector<128xf32>
    %8 = vector.multi_reduction <add>, %7, %cst_6 [0] : vector<256x128xf32> to vector<128xf32>
    %9 = vector.shape_cast %8 : vector<128xf32> to vector<1x128xf32>
    %cst_7 = arith.constant 0.000000e+00 : f32
    %10 = vector.broadcast %cst_7 : f32 to vector<8x128xf32>
    %c0_8 = arith.constant 0 : index
    %c0_9 = arith.constant 0 : index
    %11 = vector.load %arg4[%c0_8, %c0_9] : memref<8x128xf32, #tpu.memory_space<vmem>>, vector<8x128xf32>
    tpu.vector_store %arg4[%c0_8, %c0_9], %10 {strides = array<i32>} : memref<8x128xf32, #tpu.memory_space<vmem>>, vector<8x128xf32>,
    %c0_10 = arith.constant 0 : index
    %c0_11 = arith.constant 0 : index
    %12 = vector.load %arg4[%c0_10, %c0_11] : memref<8x128xf32, #tpu.memory_space<vmem>>, vector<1x128xf32>
    tpu.vector_store %arg4[%c0_10, %c0_11], %6 {strides = array<i32>} : memref<8x128xf32, #tpu.memory_space<vmem>>, vector<1x128xf32>,
    %c1 = arith.constant 1 : index
    %c0_12 = arith.constant 0 : index
    %13 = vector.load %arg4[%c1, %c0_12] : memref<8x128xf32, #tpu.memory_space<vmem>>, vector<1x128xf32>
    tpu.vector_store %arg4[%c1, %c0_12], %9 {strides = array<i32>} : memref<8x128xf32, #tpu.memory_space<vmem>>, vector<1x128xf32>,
    return
  }
  func.func @transform_0(%arg0: i32) -> (i32, i32) {
    %c0_i32 = arith.constant 0 : i32
    %c0_i32_0 = arith.constant 0 : i32
    return %arg0, %c0_i32 : i32, i32
  }
  func.func @transform_1(%arg0: i32) -> (i32, i32) {
    %c0_i32 = arith.constant 0 : i32
    %c0_i32_0 = arith.constant 0 : i32
    %c0_i32_1 = arith.constant 0 : i32
    return %c0_i32, %c0_i32_0 : i32, i32
  }
  func.func @transform_2(%arg0: i32) -> (i32, i32) {
    %c0_i32 = arith.constant 0 : i32
    %c0_i32_0 = arith.constant 0 : i32
    return %arg0, %c0_i32 : i32, i32
  }
  func.func @transform_3(%arg0: i32) -> (i32, i32) {
    %c0_i32 = arith.constant 0 : i32
    %c0_i32_0 = arith.constant 0 : i32
    return %arg0, %c0_i32 : i32, i32
  }
}

</mosaic_0001>

<bundles_post_ra>
// kernel: tpu_custom_call.1
= control target key start
LH: loop header
LB: loop body
LE: loop exit
PB: predicated region body
PF: predicated region fallthrough
CT: control target
= control target key end

     0   :  { %9 = vsyncpa [#allocation3], 0  ;;  %s1687_s0 = inlined_call_operand.vmem [shape: bf16[512,36], index: 0, kind: input, shape index: {}]   ;;  %s1688_s1 = inlined_call_operand.vmem [shape: bf16[36,128], index: 1, kind: input, shape index: {}]   ;;  %s1689_s2 = inlined_call_operand.hbm [shape: bf16[512,128], index: 2, kind: output, shape index: {0}]   ;;  %s1690_s3 = inlined_call_operand.hbm [shape: f32[16,128], index: 3, kind: output, shape index: {1}]  }
   0x1   :  { %11 = vsyncpa [#allocation3 + $0x1], 0 }
   0x2   :  { %12 = vsyncpa [#allocation5], 0 }
   0x3   :  { %14 = vsyncpa [#allocation5 + $0x1], 0  ;;  %s1387_s12 = smov 0   ;;  %s1389_s13 = smov 0  }
   0x4   :  { %s1391_s14 = smov 0   ;;  %s1393_s15 = smov 0  }
   0x5 LB: > { %s1408_s16 = sadd.s32 4294967295, %s1360_s15   ;;  %s925_s17 = sadd.s32 4294967294, %s1360_s15   ;;  %s1360_s15 = sphi %s1393_s15, %s1696_s15   ;;  %s1356_s14 = sphi %s1391_s14, %s1695_s14   ;;  %s1352_s13 = sphi %s1389_s13, %s1694_s13   ;;  %s1348_s12 = sphi %s1387_s12, %s1693_s12  }
   0x6   : > { %s1412_s18 = sadd.s32 1, %s1360_s15   ;;  %s74_s19 = sadd.s32 1, %s1356_s14 }
   0x7   : > { %s71_s20 = ssub.s32 %s1360_s15, %s1412_s18  ;;  %p84_p0 = scmp.ne.s32.totalorder %s1356_s14, %s1352_s13 }
   0x8   : > { %p72_p1 = scmp.eq.s32.totalorder %s71_s20, 0  ;;  %p85_p2 = scmp.eq.s32.totalorder %s1408_s16, 1 }
   0x9   : > { %p90_p3 = scmp.ne.s32.totalorder %s1352_s13, %s1348_s12  ;;  %p91_p4 = scmp.eq.s32.totalorder %s925_s17, 1 }
   0xa   : > { %s1423_s21 = scalar_select %p72_p1, %s1356_s14, %s74_s19  }
   0xb   : > { %p1425_p5 = por %p85_p2, %p84_p0  ;;  %p1429_p6 = por %p91_p4, %p90_p3 }
   0xc   : > { %p928_p7 = scmp.ge.s32.totalorder %s1360_s15, 1  ;;  %p147_p8 = scmp.lt.s32.totalorder %s1360_s15, 3 }
   0xe   : > { %p148_p9 = pnand %p928_p7, %p147_p8 }
   0xf   : > { %v1247_v0 = vld [vmem:[%s1688_s1] sm:$0xff] (!%p148_p9)   ;;  %v1248_v1 = vld [vmem:[%s1688_s1 + $0x8] sm:$0xff] (!%p148_p9)   ;;  %s931_s28 = sshll.u32 (!%p148_p9), %s1408_s16, 5  ;;  %v1249_v2 = vld [vmem:[%s1688_s1 + $0x10] ss:$0 sps:$4 sm:$0x33] (!%p148_p9)  }
  0x10   : > { %151 = sbr.rel (%p148_p9) target bundleno = 344 (0x158), region = 28  ;;  %1154 = vmatprep.subr.bf16.mxu0 (!%p148_p9), %v1247_v0  ;;  %p177_p10 = scmp.lt.s32.totalorder (!%p148_p9), %s931_s28, 63  ;;  %1192 = vmatprep.subr.bf16.mxu1 (!%p148_p9), %v1247_v0  ;;  %vm365_vm0 = vcmask (!%p148_p9), 1041408   ;;  %vm316_vm1 = vcmask (!%p148_p9), 293888   ;;  %v1362_v20 = vmov (!%p148_p9), 0.0  }
  0x11   : > { %1155 = vmatpush3.bf16.msra.mxu0 (!%p148_p9), %v1247_v0  ;;  %1195 = vmatpush3.bf16.msra.mxu1 (!%p148_p9), %v1247_v0  ;;  %v367_v3 = vsel (!%p148_p9), %vm365_vm0, %v1249_v2, 0  ;;  %s1483_s8 = sand.u32 (!%p148_p9), 1, %s1352_s13   ;;  %s1039_s19 = sshll.u32 (!%p148_p9), %s1408_s16, 11 }
  0x12   : > { %1156 = vmatprep.subr.bf16.mxu0 (!%p148_p9), %v1248_v1  ;;  %1193 = vmatprep.subr.bf16.mxu1 (!%p148_p9), %v1248_v1  ;;  %s930_s9 = sshll.u32 (!%p148_p9), %s1483_s8, 3  ;;  %s929_s11 = sshll.u32 (!%p148_p9), %s1483_s8, 7 }
  0x13   : > { %s1486_s10 = scalar_lea.vmem (!%p148_p9), [#allocation4], %s930_s9  ;;  %s1490_s17 = scalar_lea.vmem (!%p148_p9), [#allocation2], %s929_s11 }
  0x14   : > { %796 = vst [vmem:[%s1486_s10] sm:$0xff] (!%p148_p9), %v1362_v20  ;;  %s818_s20 = sshll.u32 (!%p148_p9), %s1490_s17, 4  ;;  %s1559_s26 = scalar_lea.hbm (!%p148_p9), %s1689_s2, %s1039_s19  ;;  %s1561_s20 = int_to_ptr.vmem [resolvable:$true] %s818_s20 }
  0x15   : > { %1157 = vmatpush3.bf16.msra.mxu0 (!%p148_p9), %v1248_v1  ;;  %1196 = vmatpush3.bf16.msra.mxu1 (!%p148_p9), %v1248_v1  ;;  %s800_s27 = scalar_lea.sflag (!%p148_p9), [#allocation3], %s1483_s8  ;;  %s1363_s29 = smov (!%p148_p9), [#allocation2]  }
  0x16   : > { %1198 = vmatprep.subr.msk.bf16.mxu0 (!%p148_p9), %vm365_vm0, %v1249_v2  ;;  %1199 = vmatprep.subr.msk.bf16.mxu1 (!%p148_p9), %vm365_vm0, %v1249_v2  ;;  %s1270_s30 = sshll.u32 (!%p148_p9), %s1363_s29, 4  ;;  %s1271_s30 = int_to_ptr.vmem [resolvable:$false] %s1270_s30 }
  0x17   : > { %s1698_s28 = smov (!%p177_p10, %s931_s28), 63  ;;  %p1273_p0 = scmp.lt.s32.totalorder %s1561_s20, %s1271_s30 }
  0x18   : > { %s932_s4 = sshll.u32 %s1698_s28, 2  ;;  %s1266_s28 = scalar_lea.vmem %s1561_s20, 2048 }
  0x19   : > { %s1448_s7 = scalar_lea.vmem %s1687_s0, %s932_s4  ;;  %1159 = vmatpush3.bf16.msra.mxu0 %v367_v3  ;;  %1197 = vmatpush3.bf16.msra.mxu1 %v367_v3  ;;  %p1267_p11 = scmp.ne.s32.totalorder %s1561_s20, %s1266_s28 }
  0x1a   : > { %v1250_v4 = vld [vmem:[%s1448_s7] sm:$0xff]   ;;  %v1251_v5 = vld [vmem:[%s1448_s7 + $0x8] sm:$0xff]   ;;  %v1252_v6 = vld [vmem:[%s1448_s7 + $0x10] sm:$0xff]   ;;  %s1272_s4 = scalar_lea.vmem %s1271_s30, 4096 }
  0x1b   : > { %1160 = vmatprep.mubr.msk.bf16.mxu0 %vm316_vm1, %v1250_v4  ;;  %v1253_v7 = vld [vmem:[%s1448_s7 + $0x18] sm:$0xff]   ;;  %v1258_v8 = vld [vmem:[%s1448_s7 + $0x40] sm:$0xff]   ;;  %v1259_v9 = vld [vmem:[%s1448_s7 + $0x48] sm:$0xff]   ;;  %p1268_p12 = pnand %p1267_p11, %p1425_p5  ;;  %p1274_p1 = scmp.lt.s32.totalorder %s1272_s4, %s1266_s28 }
  0x1c   : > { %1161 = vmatmul.mubr.msk.bf16.vlgmr.msra.gmra.mrb[0].mxu0 %vm316_vm1, %v1251_v5  ;;  %1176 = vmatprep.mubr.msk.bf16.mxu1 %vm316_vm1, %v1258_v8  ;;  %v1260_v10 = vld [vmem:[%s1448_s7 + $0x50] sm:$0xff]   ;;  %v1254_v11 = vld [vmem:[%s1448_s7 + $0x20] sm:$0xff]   ;;  %v1261_v12 = vld [vmem:[%s1448_s7 + $0x58] sm:$0xff]  }
  0x1d   : > { %1164 = vmatprep.mubr.msk.bf16.mxu0 %vm316_vm1, %v1252_v6  ;;  %1177 = vmatmul.mubr.msk.bf16.vlgmr.msra.gmra.mrb[0].mxu1 %vm316_vm1, %v1259_v9  ;;  %v1262_v13 = vld [vmem:[%s1448_s7 + $0x60] sm:$0xff]   ;;  %v1255_v14 = vld [vmem:[%s1448_s7 + $0x28] sm:$0xff]   ;;  %v1256_v15 = vld [vmem:[%s1448_s7 + $0x30] sm:$0xff]   ;;  %p1269_p13 = pneg %p1268_p12  ;;  %p1275_p2 = por %p1274_p1, %p1273_p0 }
  0x1e   : > { %1180 = vmatprep.mubr.msk.bf16.mxu1 %vm316_vm1, %v1260_v10  ;;  %v1263_v16 = vld [vmem:[%s1448_s7 + $0x68] sm:$0xff]   ;;  %v1264_v17 = vld [vmem:[%s1448_s7 + $0x70] sm:$0xff]   ;;  %v1257_v18 = vld [vmem:[%s1448_s7 + $0x38] sm:$0xff]  }
  0x1f   : > { %v1265_v19 = vld [vmem:[%s1448_s7 + $0x78] sm:$0xff]   ;;  %p1276_p3 = pnand %p1275_p2, %p1269_p13 }
  0x24   : > { %1165 = vmatmul.mubr.msk.bf16.gmra.mrb[4].mxu0 %vm316_vm1, %v1253_v7 }
  0x25   : > { %1168 = vmatprep.mubr.msk.bf16.mxu0 %vm316_vm1, %v1254_v11  ;;  %1181 = vmatmul.mubr.msk.bf16.gmra.mrb[4].mxu1 %vm316_vm1, %v1261_v12 }
  0x26   : > { %1184 = vmatprep.mubr.msk.bf16.mxu1 %vm316_vm1, %v1262_v13 }
  0x2c   : > { %1169 = vmatmul.mubr.msk.bf16.gmra.mrb[8].mxu0 %vm316_vm1, %v1255_v14 }
  0x2d   : > { %1172 = vmatprep.mubr.msk.bf16.mxu0 %vm316_vm1, %v1256_v15  ;;  %1185 = vmatmul.mubr.msk.bf16.gmra.mrb[8].mxu1 %vm316_vm1, %v1263_v16 }
  0x2e   : > { %1188 = vmatprep.mubr.msk.bf16.mxu1 %vm316_vm1, %v1264_v17 }
  0x34   : > { %1173 = vmatmul.mubr.msk.bf16.gmra.mrb[12].mxu0 %vm316_vm1, %v1257_v18 }
  0x35   : > { %1189 = vmatmul.mubr.msk.bf16.gmra.mrb[12].mxu1 %vm316_vm1, %v1265_v19 }
  0xef   : > { %v1162_v21 = vpop.f32.mrb[0].mxu0 }
  0xf0   : > { %v403_v22 = vpop.f32.mrb[1].mxu0  ;;  %v1493_v30 = vpop.f32.mrb[0].mxu1  ;;  %v729_v31 = vmul.f32 %v1162_v21, %v1162_v21 }
  0xf1   : > { %v1163_v23 = vpop.f32.mrb[2].mxu0  ;;  %v727_v26 = vmul.f32 %v403_v22, %v403_v22  ;;  %v1496_v34 = vpop.f32.mrb[1].mxu1 }
  0xf2   : > { %v1048_v24 = vpack.c.bf16 %v1163_v23, %v1162_v21  ;;  %v406_v25 = vpop.f32.mrb[3].mxu0  ;;  %v1498_v35 = vpop.f32.mrb[2].mxu1  ;;  %v730_v36 = vmul.f32 %v1163_v23, %v1163_v23 }
  0xf3   : > { %v1043_v27 = vpack.c.bf16 %v406_v25, %v403_v22  ;;  %v690_v28 = vadd.f32 %v406_v25, %v403_v22  ;;  %v728_v29 = vmul.f32 %v406_v25, %v406_v25  ;;  %v1088_v40 = vpack.c.bf16 %v1498_v35, %v1493_v30  ;;  %v1502_v41 = vpop.f32.mrb[3].mxu1 }
  0xf4   : > { %1120 = vst [vmem:[%s1490_s17 + $0x8] sm:$0xff] %v1048_v24   ;;  %v1083_v43 = vpack.c.bf16 %v1502_v41, %v1496_v34 }
  0xf5   : > { %1044 = vst [vmem:[%s1490_s17] sm:$0xff] %v1043_v27   ;;  %v691_v32 = vadd.f32 %v1162_v21, %v690_v28  ;;  %v759_v33 = vadd.f32 %v728_v29, %v727_v26  ;;  %1128 = vst [vmem:[%s1490_s17 + $0x48] sm:$0xff] %v1088_v40  }
  0xf6   : > { %1127 = vst [vmem:[%s1490_s17 + $0x40] sm:$0xff] %v1083_v43  }
  0xf7   : > { %v760_v37 = vadd.f32 %v759_v33, %v729_v31  ;;  %v1166_v38 = vpop.f32.mrb[4].mxu0  ;;  %v692_v39 = vadd.f32 %v1163_v23, %v691_v32 }
  0xf8   : > { %v419_v42 = vpop.f32.mrb[5].mxu0  ;;  %v1509_v54 = vpop.f32.mrb[4].mxu1  ;;  %v733_v55 = vmul.f32 %v1166_v38, %v1166_v38 }
  0xf9   : > { %v693_v44 = vadd.f32 %v692_v39, %v419_v42  ;;  %v731_v45 = vmul.f32 %v419_v42, %v419_v42  ;;  %v761_v46 = vadd.f32 %v760_v37, %v730_v36  ;;  %v1167_v47 = vpop.f32.mrb[6].mxu0  ;;  %v1512_v58 = vpop.f32.mrb[5].mxu1 }
  0xfa   : > { %v1058_v48 = vpack.c.bf16 %v1167_v47, %v1166_v38  ;;  %v422_v49 = vpop.f32.mrb[7].mxu0  ;;  %v1514_v59 = vpop.f32.mrb[6].mxu1  ;;  %v734_v60 = vmul.f32 %v1167_v47, %v1167_v47 }
  0xfb   : > { %v762_v50 = vadd.f32 %v761_v46, %v731_v45  ;;  %v1053_v51 = vpack.c.bf16 %v422_v49, %v419_v42  ;;  %v694_v52 = vadd.f32 %v693_v44, %v422_v49  ;;  %v732_v53 = vmul.f32 %v422_v49, %v422_v49  ;;  %v1518_v1 = vpop.f32.mrb[7].mxu1 }
  0xfc   : > { %1122 = vst [vmem:[%s1490_s17 + $0x18] sm:$0xff] %v1058_v48   ;;  %v1098_v0 = vpack.c.bf16 %v1514_v59, %v1509_v54  ;;  %v1093_v3 = vpack.c.bf16 %v1518_v1, %v1512_v58 }
  0xfd   : > { %1121 = vst [vmem:[%s1490_s17 + $0x10] sm:$0xff] %v1053_v51   ;;  %v695_v56 = vadd.f32 %v1166_v38, %v694_v52  ;;  %v763_v57 = vadd.f32 %v762_v50, %v732_v53 }
  0xfe   : > { %1130 = vst [vmem:[%s1490_s17 + $0x58] sm:$0xff] %v1098_v0   ;;  %1129 = vst [vmem:[%s1490_s17 + $0x50] sm:$0xff] %v1093_v3  }
  0xff   : > { %v764_v61 = vadd.f32 %v763_v57, %v733_v55  ;;  %v1170_v62 = vpop.f32.mrb[8].mxu0  ;;  %v696_v63 = vadd.f32 %v1167_v47, %v695_v56  ;;  %v743_v47 = vmul.f32 %v1496_v34, %v1496_v34 }
 0x100   : > { %v435_v2 = vpop.f32.mrb[9].mxu0  ;;  %v1525_v14 = vpop.f32.mrb[8].mxu1  ;;  %v737_v15 = vmul.f32 %v1170_v62, %v1170_v62 }
 0x101   : > { %v697_v4 = vadd.f32 %v696_v63, %v435_v2  ;;  %v735_v5 = vmul.f32 %v435_v2, %v435_v2  ;;  %v765_v6 = vadd.f32 %v764_v61, %v734_v60  ;;  %v1171_v7 = vpop.f32.mrb[10].mxu0  ;;  %v1528_v18 = vpop.f32.mrb[9].mxu1 }
 0x102   : > { %v1068_v8 = vpack.c.bf16 %v1171_v7, %v1170_v62  ;;  %v438_v9 = vpop.f32.mrb[11].mxu0  ;;  %v1530_v19 = vpop.f32.mrb[10].mxu1  ;;  %v738_v20 = vmul.f32 %v1171_v7, %v1171_v7 }
 0x103   : > { %v766_v10 = vadd.f32 %v765_v6, %v735_v5  ;;  %v1063_v11 = vpack.c.bf16 %v438_v9, %v435_v2  ;;  %v698_v12 = vadd.f32 %v697_v4, %v438_v9  ;;  %v736_v13 = vmul.f32 %v438_v9, %v438_v9  ;;  %v1534_v25 = vpop.f32.mrb[11].mxu1 }
 0x104   : > { %1124 = vst [vmem:[%s1490_s17 + $0x28] sm:$0xff] %v1068_v8   ;;  %v1108_v24 = vpack.c.bf16 %v1530_v19, %v1525_v14  ;;  %v1103_v27 = vpack.c.bf16 %v1534_v25, %v1528_v18 }
 0x105   : > { %1123 = vst [vmem:[%s1490_s17 + $0x20] sm:$0xff] %v1063_v11   ;;  %v699_v16 = vadd.f32 %v1170_v62, %v698_v12  ;;  %v767_v17 = vadd.f32 %v766_v10, %v736_v13  ;;  %v744_v62 = vmul.f32 %v1502_v41, %v1502_v41 }
 0x106   : > { %1132 = vst [vmem:[%s1490_s17 + $0x68] sm:$0xff] %v1108_v24   ;;  %1131 = vst [vmem:[%s1490_s17 + $0x60] sm:$0xff] %v1103_v27  }
 0x107   : > { %v768_v21 = vadd.f32 %v767_v17, %v737_v15  ;;  %v1174_v22 = vpop.f32.mrb[12].mxu0  ;;  %v700_v23 = vadd.f32 %v1171_v7, %v699_v16 }
 0x108   : > { %v451_v26 = vpop.f32.mrb[13].mxu0  ;;  %v1541_v42 = vpop.f32.mrb[12].mxu1  ;;  %v741_v43 = vmul.f32 %v1174_v22, %v1174_v22 }
 0x109   : > { %v701_v28 = vadd.f32 %v700_v23, %v451_v26  ;;  %v739_v29 = vmul.f32 %v451_v26, %v451_v26  ;;  %v769_v31 = vadd.f32 %v768_v21, %v738_v20  ;;  %v1175_v32 = vpop.f32.mrb[14].mxu0  ;;  %v1546_v46 = vpop.f32.mrb[13].mxu1 }
 0x10a   : > { %v1078_v33 = vpack.c.bf16 %v1175_v32, %v1174_v22  ;;  %v454_v36 = vpop.f32.mrb[15].mxu0  ;;  %v1550_v48 = vpop.f32.mrb[14].mxu1  ;;  %v742_v49 = vmul.f32 %v1175_v32, %v1175_v32 }
 0x10b   : > { %v770_v37 = vadd.f32 %v769_v31, %v739_v29  ;;  %v1073_v38 = vpack.c.bf16 %v454_v36, %v451_v26  ;;  %v702_v39 = vadd.f32 %v701_v28, %v454_v36  ;;  %v740_v40 = vmul.f32 %v454_v36, %v454_v36  ;;  %v1554_v53 = vpop.f32.mrb[15].mxu1 }
 0x10c   : > { %1126 = vst [vmem:[%s1490_s17 + $0x38] sm:$0xff] %v1078_v33   ;;  %v1118_v52 = vpack.c.bf16 %v1550_v48, %v1541_v42  ;;  %v1113_v55 = vpack.c.bf16 %v1554_v53, %v1546_v46 }
 0x10d   : > { %1125 = vst [vmem:[%s1490_s17 + $0x30] sm:$0xff] %v1073_v38   ;;  %v703_v44 = vadd.f32 %v1174_v22, %v702_v39  ;;  %v771_v45 = vadd.f32 %v770_v37, %v740_v40 }
 0x10e   : > { %1134 = vst [vmem:[%s1490_s17 + $0x78] sm:$0xff] %v1118_v52   ;;  %1133 = vst [vmem:[%s1490_s17 + $0x70] sm:$0xff] %v1113_v55  }
 0x10f   : > { %v772_v50 = vadd.f32 %v771_v45, %v741_v43  ;;  %v704_v51 = vadd.f32 %v1175_v32, %v703_v44 }
 0x111   : > { %v705_v56 = vadd.f32 %v704_v51, %v1496_v34  ;;  %v773_v57 = vadd.f32 %v772_v50, %v742_v49 }
 0x113   : > { %v774_v60 = vadd.f32 %v773_v57, %v743_v47  ;;  %v706_v61 = vadd.f32 %v705_v56, %v1502_v41 }
 0x114   : > { %1279 = shalt.err (!%p1276_p3)
}
 0x115   : > { %s1280_s5 = scalar_lea.hbm %s1559_s26, 2048  ;;  %s1284_s9 = scalar_lea.hbm %s1689_s2, 4096 }
 0x116   : > { %p1281_p4 = scmp.ne.s32.totalorder %s1559_s26, %s1280_s5  ;;  %p1285_p9 = scmp.lt.u32.totalorder %s1559_s26, %s1689_s2 }
 0x117   : > { %p1286_p10 = scmp.lt.u32.totalorder %s1284_s9, %s1280_s5  ;;  %p1288_p12 = scmp.lt.u32.totalorder %s1280_s5, %s1559_s26 }
 0x118   : > { %p1282_p7 = pnand %p1281_p4, %p1425_p5 }
 0x119   : > { %p1287_p11 = por %p1286_p10, %p1285_p9 }
 0x11a   : > { %p1283_p8 = pneg %p1282_p7 }
 0x11b   : > { %p1289_p13 = por %p1288_p12, %p1287_p11 }
 0x11d   : > { %p1290_p0 = pnand %p1289_p13, %p1283_p8 }
 0x11f   : > { %1293 = shalt.err (!%p1290_p0)
}
 0x120   : > { %s1364_s19 = smov 64   ;;  %s1365_s24 = smov 4   ;;  %v745_v34 = vmul.f32 %v1493_v30, %v1493_v30  ;;  %v707_v41 = vadd.f32 %v1493_v30, %v706_v61  ;;  %v775_v63 = vadd.f32 %v774_v60, %v744_v62  ;;  %v746_v0 = vmul.f32 %v1498_v35, %v1498_v35 }
 0x121   : > { %1200 = dma.vmem_to_hbm [thread:$0]  (%p1425_p5), %s1561_s20, 2048, %s1559_s26, %s800_s27, %s1364_s19, %s1364_s19, %s1365_s24   ;;  %v747_v4 = vmul.f32 %v1512_v58, %v1512_v58  ;;  %v748_v9 = vmul.f32 %v1518_v1, %v1518_v1  ;;  %v749_v30 = vmul.f32 %v1509_v54, %v1509_v54  ;;  %v752_v20 = vmul.f32 %v1534_v25, %v1534_v25 }
 0x122   : > { %v776_v2 = vadd.f32 %v775_v63, %v745_v34  ;;  %v708_v3 = vadd.f32 %v1498_v35, %v707_v41  ;;  %v750_v35 = vmul.f32 %v1514_v59, %v1514_v59  ;;  %v756_v29 = vmul.f32 %v1554_v53, %v1554_v53  ;;  %s1004_s20 = sshll.u32 %s1408_s16, 7  ;;  %s834_s25 = sshll.u32 %s1486_s10, 4  ;;  %s1645_s25 = int_to_ptr.vmem [resolvable:$true] %s834_s25 }
 0x123   : > { %v758_v32 = vmul.f32 %v1550_v48, %v1550_v48  ;;  %s1643_s28 = scalar_lea.hbm %s1690_s3, %s1004_s20  ;;  %s805_s29 = scalar_lea.sflag [#allocation5], %s1483_s8 }
 0x124   : > { %v709_v5 = vadd.f32 %v708_v3, %v1512_v58  ;;  %v777_v6 = vadd.f32 %v776_v2, %v746_v0  ;;  %v751_v58 = vmul.f32 %v1528_v18, %v1528_v18  ;;  %s1294_s30 = scalar_lea.vmem %s1645_s25, 128  ;;  %s1366_s16 = smov [#allocation4]  }
 0x125   : > { %p1295_p1 = scmp.ne.s32.totalorder %s1645_s25, %s1294_s30  ;;  %s1298_s4 = sshll.u32 %s1366_s16, 4  ;;  %s1299_s4 = int_to_ptr.vmem [resolvable:$false] %s1298_s4 }
 0x126   : > { %v778_v7 = vadd.f32 %v777_v6, %v747_v4  ;;  %v710_v8 = vadd.f32 %v709_v5, %v1518_v1  ;;  %s1300_s5 = scalar_lea.vmem %s1299_s4, 256  ;;  %p1301_p4 = scmp.lt.s32.totalorder %s1645_s25, %s1299_s4 }
 0x127   : > { %p1296_p2 = pnand %p1295_p1, %p1425_p5  ;;  %p1302_p7 = scmp.lt.s32.totalorder %s1300_s5, %s1294_s30 }
 0x128   : > { %v711_v10 = vadd.f32 %v1509_v54, %v710_v8  ;;  %v779_v11 = vadd.f32 %v778_v7, %v748_v9  ;;  %v753_v54 = vmul.f32 %v1525_v14, %v1525_v14 }
 0x129   : > { %p1297_p3 = pneg %p1296_p2  ;;  %p1303_p8 = por %p1302_p7, %p1301_p4 }
 0x12a   : > { %v780_v12 = vadd.f32 %v779_v11, %v749_v30  ;;  %v712_v13 = vadd.f32 %v1514_v59, %v711_v10  ;;  %v754_v59 = vmul.f32 %v1530_v19, %v1530_v19 }
 0x12b   : > { %p1304_p9 = pnand %p1303_p8, %p1297_p3 }
 0x12c   : > { %v713_v15 = vadd.f32 %v712_v13, %v1528_v18  ;;  %v781_v16 = vadd.f32 %v780_v12, %v750_v35  ;;  %v755_v18 = vmul.f32 %v1546_v46, %v1546_v46 }
 0x12e   : > { %v782_v17 = vadd.f32 %v781_v16, %v751_v58  ;;  %v714_v1 = vadd.f32 %v713_v15, %v1534_v25 }
 0x130   : > { %v715_v21 = vadd.f32 %v1525_v14, %v714_v1  ;;  %v783_v22 = vadd.f32 %v782_v17, %v752_v20  ;;  %v757_v14 = vmul.f32 %v1541_v42, %v1541_v42 }
 0x132   : > { %v784_v23 = vadd.f32 %v783_v22, %v753_v54  ;;  %v716_v24 = vadd.f32 %v1530_v19, %v715_v21 }
 0x134   : > { %v717_v26 = vadd.f32 %v716_v24, %v1546_v46  ;;  %v785_v27 = vadd.f32 %v784_v23, %v754_v59 }
 0x136   : > { %v786_v28 = vadd.f32 %v785_v27, %v755_v18  ;;  %v718_v25 = vadd.f32 %v717_v26, %v1554_v53 }
 0x138   : > { %v719_v31 = vadd.f32 %v1541_v42, %v718_v25  ;;  %v787_v19 = vadd.f32 %v786_v28, %v756_v29 }
 0x13a   : > { %v720_v33 = vadd.f32 %v1550_v48, %v719_v31  ;;  %v788_v36 = vadd.f32 %v787_v19, %v757_v14 }
 0x13c   : > { %v721_v37 = vrot.slane %v720_v33, 4  ;;  %v789_v38 = vadd.f32 %v788_v36, %v758_v32 }
 0x13e   : > { %v722_v39 = vadd.f32 %v721_v37, %v720_v33  ;;  %v790_v40 = vrot.slane %v789_v38, 4 }
 0x140   : > { %v723_v43 = vrot.slane %v722_v39, 2  ;;  %v791_v44 = vadd.f32 %v790_v40, %v789_v38 }
 0x142   : > { %v724_v45 = vadd.f32 %v723_v43, %v722_v39  ;;  %v792_v42 = vrot.slane %v791_v44, 2 }
 0x144   : > { %v725_v46 = vrot.slane %v724_v45, 1  ;;  %v793_v47 = vadd.f32 %v792_v42, %v791_v44 }
 0x146   : > { %v726_v49 = vadd.f32 %v725_v46, %v724_v45  ;;  %v794_v50 = vrot.slane %v793_v47, 1 }
 0x148   : > { %v795_v48 = vadd.f32 %v794_v50, %v793_v47  ;;  %797 = vst [vmem:[%s1486_s10] sm:$0x1] %v726_v49 }
 0x14a   : > { %798 = vst [vmem:[%s1486_s10 + $0x1] sm:$0x1] %v795_v48 }
 0x14b   : > { %1307 = shalt.err (!%p1304_p9)
}
 0x14c   : > { %s1308_s8 = scalar_lea.hbm %s1643_s28, 128  ;;  %s1312_s7 = scalar_lea.hbm %s1690_s3, 256 }
 0x14d   : > { %p1309_p10 = scmp.ne.s32.totalorder %s1643_s28, %s1308_s8  ;;  %p1313_p13 = scmp.lt.u32.totalorder %s1643_s28, %s1690_s3 }
 0x14e   : > { %p1314_p0 = scmp.lt.u32.totalorder %s1312_s7, %s1308_s8  ;;  %p1316_p2 = scmp.lt.u32.totalorder %s1308_s8, %s1643_s28 }
 0x14f   : > { %p1310_p11 = pnand %p1309_p10, %p1425_p5 }
 0x150   : > { %p1315_p1 = por %p1314_p0, %p1313_p13 }
 0x151   : > { %p1311_p12 = pneg %p1310_p11 }
 0x152   : > { %p1317_p3 = por %p1316_p2, %p1315_p1 }
 0x154   : > { %p1318_p4 = pnand %p1317_p3, %p1311_p12 }
 0x156   : > { %1321 = shalt.err (!%p1318_p4)
}
 0x157   : > { %1201 = dma.vmem_to_hbm [thread:$0]  (%p1425_p5), %s1645_s25, 128, %s1643_s28, %s805_s29  }
 0x158 PF: > { %p1211_p7 = scmp.ge.s32.totalorder %s1360_s15, 2  ;;  %s846_s17 = sand.u32 1, %s1348_s12  }
 0x159   : > { %s847_s19 = scalar_lea.sflag [#allocation3], %s846_s17 }
 0x15a   : > { %p1205_p8 = pnand %p1211_p7, %p1429_p6 }
 0x15c   : > { %1339 = dma.done.wait (!%p1205_p8), %s847_s19, 2048  }
 0x15d   : > { %1341 = vsyncadd (!%p1205_p8), %s847_s19, 4294965248  ;;  %s856_s24 = scalar_lea.sflag [#allocation5], %s846_s17 }
 0x15e   : > { %1343 = dma.done.wait (!%p1205_p8), %s856_s24, 128  }
 0x15f   : > { %1345 = vsyncadd (!%p1205_p8), %s856_s24, 4294967168  ;;  %p17_p5 = scmp.ge.s32.totalorder %s1412_s18, 4   ;;  %s1693_s12 = smov %s1352_s13 }
 0x160   : > { %s1694_s13 = smov %s1356_s14  ;;  %s1695_s14 = smov %s1423_s21 }
 0x161   : > { %s1696_s15 = smov %s1412_s18  ;;  %19 = sbr.rel (!%p17_p5) target bundleno = 5 (0x5), region = 80 }
 0x168   :  { %861 = vsyncpa [#allocation3], 1 }
 0x169   :  { %863 = vsyncpa [#allocation3 + $0x1], 1 }
 0x16a   :  { %864 = vsyncpa [#allocation5], 1 }
 0x16b   :  { %866 = vsyncpa [#allocation5 + $0x1], 1 }

</bundles_post_ra>
